<compile_context>
chip_gen: v6e
topology: v6e:2x2x1
jax: 0.10.0
libtpu: 0.0.40
codegen_flags: <defaults>
</compile_context>

<pallas_src>
import jax
import jax.numpy as jnp
from jax.experimental import pallas as pl
from jax.experimental.pallas import tpu as pltpu

IN_FEATURES = 28 * 28      # 784
OUT_FEATURES = 10
PADDED_OUT = 128           # lane-dense class axis


def _round_up(x, m):
    return ((x + m - 1) // m) * m


def _linear_softmax_kernel(x_ref, w_ref, b_ref, o_ref):
    # x_ref: [TB, 784]  w_ref: [784, 128]  b_ref: [1, 128]  o_ref: [TB, 128]
    logits = jnp.dot(
        x_ref[...], w_ref[...], preferred_element_type=jnp.float32
    ) + b_ref[...]
    # Numerically stable softmax along the (lane) class axis; padded classes
    # carry bias = -1e30 so their exp() is exactly 0 and the denominator is
    # identical to the unpadded 10-class softmax.
    m = jnp.max(logits, axis=-1, keepdims=True)
    e = jnp.exp(logits - m)
    denom = jnp.sum(e, axis=-1, keepdims=True)
    # Exact divide: keeps row sums == 1 to f32 precision (approx reciprocal
    # previously broke the sum-to-one check; the kernel is mem-bound anyway).
    o_ref[...] = (e / denom).astype(o_ref.dtype)


def model_forward(x, weight, bias):
    """x: [B, 28, 28] (or [B, 1, 28, 28]); weight: [10, 784]; bias: [10]."""
    b = x.shape[0]
    x_flat = x.reshape(b, -1).astype(jnp.float32)            # Flatten (glue)
    assert x_flat.shape[1] == IN_FEATURES

    # PyTorch-style [10, 784] -> padded, transposed [784, 128].
    w_t = weight.T.astype(jnp.float32)                        # [784, 10]
    w_pad = jnp.zeros((IN_FEATURES, PADDED_OUT), jnp.float32)
    w_pad = w_pad.at[:, :OUT_FEATURES].set(w_t)
    # Padded bias columns get -1e30 so softmax over the 128 lanes matches the
    # real 10-class softmax exactly (exp(-1e30 - m) == 0).
    b_pad = jnp.full((1, PADDED_OUT), -1e30, jnp.float32)
    b_pad = b_pad.at[0, :OUT_FEATURES].set(bias.astype(jnp.float32))

    # Batch tile: big enough to amortize per-step overhead, small enough to
    # fit comfortably in the scoped VMEM limit on v7x (TB=1024 f32 x block is
    # ~3.1 MiB, ~6.3 MiB double-buffered; w_pad is ~0.4 MiB resident).
    tb = min(1024, _round_up(b, 8))
    grid = (pl.cdiv(b, tb),)

    cost = pl.CostEstimate(
        flops=2 * b * IN_FEATURES * PADDED_OUT,
        transcendentals=b * PADDED_OUT,
        bytes_accessed=(b * IN_FEATURES * 4             # x
                        + IN_FEATURES * PADDED_OUT * 4  # w
                        + PADDED_OUT * 4                # bias
                        + b * PADDED_OUT * 4),          # out
    )

    out_pad = pl.pallas_call(
        _linear_softmax_kernel,
        out_shape=jax.ShapeDtypeStruct((b, PADDED_OUT), jnp.float32),
        grid=grid,
        in_specs=[
            pl.BlockSpec((tb, IN_FEATURES), lambda i: (i, 0)),
            pl.BlockSpec((IN_FEATURES, PADDED_OUT), lambda i: (0, 0)),
            pl.BlockSpec((1, PADDED_OUT), lambda i: (0, 0)),
        ],
        out_specs=pl.BlockSpec((tb, PADDED_OUT), lambda i: (i, 0)),
        compiler_params=pltpu.CompilerParams(
            dimension_semantics=("parallel",),
        ),
        cost_estimate=cost,
    )(x_flat, w_pad, b_pad)

    # Drop the padded class lanes (their probabilities are exactly 0).
    return out_pad[:, :OUT_FEATURES]


if __name__ == "__main__":
    key = jax.random.PRNGKey(0)
    k_x, k_w, k_b = jax.random.split(key, 3)

    batch = 8
    # Example input matching the module's expected 28x28 images.
    x = jax.random.normal(k_x, (batch, 28, 28), dtype=jnp.float32)

    # Deterministic parameter init (PyTorch Linear-style uniform bound).
    bound = 1.0 / (IN_FEATURES ** 0.5)
    weight = jax.random.uniform(
        k_w, (OUT_FEATURES, IN_FEATURES), minval=-bound, maxval=bound,
        dtype=jnp.float32)
    bias = jax.random.uniform(
        k_b, (OUT_FEATURES,), minval=-bound, maxval=bound, dtype=jnp.float32)

    out = model_forward(x, weight, bias)
    jax.block_until_ready(out)

    # Sanity: reference in plain JAX.
    ref = jax.nn.softmax(x.reshape(batch, -1) @ weight.T + bias, axis=1)
    assert out.shape == (batch, OUT_FEATURES)
    assert jnp.allclose(out, ref, atol=1e-5, rtol=1e-5)
    assert jnp.allclose(jnp.sum(out, axis=1), 1.0, atol=1e-4)

    print("KERNEL_OK")
</pallas_src>

<mosaic_0001>
module attributes {stable_mosaic.version = 11 : i64} {
  func.func @_linear_softmax_kernel(%arg0: i32, %arg1: memref<8x784xf32, #tpu.memory_space<vmem>>, %arg2: memref<784x128xf32, #tpu.memory_space<vmem>>, %arg3: memref<1x128xf32, #tpu.memory_space<vmem>>, %arg4: memref<8x128xf32, #tpu.memory_space<vmem>>) attributes {dimension_semantics = [#tpu.dimension_semantics<parallel>], iteration_bounds = array<i64: 1>, scalar_prefetch = 0 : i64, scratch_operands = 0 : i64, tpu.core_type = #tpu.core_type<tc>, window_params = [{transform_indices = @transform_0, window_bounds = array<i64: 8, 784>}, {pipeline_mode = #tpu.pipeline_mode<synchronous>, transform_indices = @transform_1, window_bounds = array<i64: 784, 128>}, {pipeline_mode = #tpu.pipeline_mode<synchronous>, transform_indices = @transform_2, window_bounds = array<i64: 1, 128>}, {transform_indices = @transform_3, window_bounds = array<i64: 8, 128>}]} {
    %c0 = arith.constant 0 : index
    %c0_0 = arith.constant 0 : index
    %0 = vector.load %arg1[%c0, %c0_0] : memref<8x784xf32, #tpu.memory_space<vmem>>, vector<8x784xf32>
    %c0_1 = arith.constant 0 : index
    %c0_2 = arith.constant 0 : index
    %1 = vector.load %arg2[%c0_1, %c0_2] : memref<784x128xf32, #tpu.memory_space<vmem>>, vector<784x128xf32>
    %cst = arith.constant dense<0.000000e+00> : vector<8x128xf32>
    %2 = tpu.matmul %0, %1, %cst {dimension_numbers = #tpu.dot_dimension_numbers<[1], [0], [0], [1], [0, 0, 1, 1], [], []>} : vector<8x784xf32>, vector<784x128xf32>, vector<8x128xf32> -> vector<8x128xf32>
    %c0_3 = arith.constant 0 : index
    %c0_4 = arith.constant 0 : index
    %3 = vector.load %arg3[%c0_3, %c0_4] : memref<1x128xf32, #tpu.memory_space<vmem>>, vector<1x128xf32>
    %4 = vector.broadcast %3 : vector<1x128xf32> to vector<8x128xf32>
    %5 = arith.addf %2, %4 : vector<8x128xf32>
    %cst_5 = arith.constant dense<0xFF800000> : vector<8xf32>
    %6 = vector.multi_reduction <maximumf>, %5, %cst_5 [1] : vector<8x128xf32> to vector<8xf32>
    %7 = vector.shape_cast %6 : vector<8xf32> to vector<8x1xf32>
    %8 = vector.broadcast %7 : vector<8x1xf32> to vector<8x128xf32>
    %9 = arith.subf %5, %8 : vector<8x128xf32>
    %10 = math.exp %9 : vector<8x128xf32>
    %cst_6 = arith.constant dense<0.000000e+00> : vector<8xf32>
    %11 = vector.multi_reduction <add>, %10, %cst_6 [1] : vector<8x128xf32> to vector<8xf32>
    %12 = vector.shape_cast %11 : vector<8xf32> to vector<8x1xf32>
    %13 = vector.broadcast %12 : vector<8x1xf32> to vector<8x128xf32>
    %14 = arith.divf %10, %13 : vector<8x128xf32>
    %c0_7 = arith.constant 0 : index
    %c0_8 = arith.constant 0 : index
    %15 = vector.load %arg4[%c0_7, %c0_8] : memref<8x128xf32, #tpu.memory_space<vmem>>, vector<8x128xf32>
    tpu.vector_store %arg4[%c0_7, %c0_8], %14 {strides = array<i32>} : memref<8x128xf32, #tpu.memory_space<vmem>>, vector<8x128xf32>,
    return
  }
  func.func @transform_0(%arg0: i32) -> (i32, i32) {
    %c0_i32 = arith.constant 0 : i32
    %c0_i32_0 = arith.constant 0 : i32
    return %arg0, %c0_i32 : i32, i32
  }
  func.func @transform_1(%arg0: i32) -> (i32, i32) {
    %c0_i32 = arith.constant 0 : i32
    %c0_i32_0 = arith.constant 0 : i32
    %c0_i32_1 = arith.constant 0 : i32
    return %c0_i32, %c0_i32_0 : i32, i32
  }
  func.func @transform_2(%arg0: i32) -> (i32, i32) {
    %c0_i32 = arith.constant 0 : i32
    %c0_i32_0 = arith.constant 0 : i32
    %c0_i32_1 = arith.constant 0 : i32
    return %c0_i32, %c0_i32_0 : i32, i32
  }
  func.func @transform_3(%arg0: i32) -> (i32, i32) {
    %c0_i32 = arith.constant 0 : i32
    %c0_i32_0 = arith.constant 0 : i32
    return %arg0, %c0_i32 : i32, i32
  }
}

</mosaic_0001>

<bundles_post_ra>
// kernel: tpu_custom_call.1
= control target key start
LH: loop header
LB: loop body
LE: loop exit
PB: predicated region body
PF: predicated region fallthrough
CT: control target
= control target key end

     0   :  { %8 = vsyncpa [#allocation3], 0  ;;  %s696_s0 = inlined_call_operand.hbm [shape: f32[8,784], index: 0, kind: input, shape index: {}]   ;;  %s697_s1 = inlined_call_operand.hbm [shape: f32[784,128], index: 1, kind: input, shape index: {}]   ;;  %s698_s2 = inlined_call_operand.vmem [shape: f32[1,128], index: 2, kind: input, shape index: {}]   ;;  %s699_s3 = inlined_call_operand.hbm [shape: f32[8,128], index: 3, kind: output, shape index: {}]  }
   0x1   :  { %9 = vsyncpa [#allocation6], 0 }
   0x2   :  { %10 = vsyncpa [#allocation4], 0  ;;  %s657_s12 = smov [#allocation2]   ;;  %s658_s14 = smov [#allocation5]  }
   0x3   :  { %s17_s13 = sshll.u32 %s657_s12, 4  ;;  %s26_s15 = sshll.u32 %s658_s14, 4  ;;  %s18_s13 = int_to_ptr.vmem [resolvable:$true] %s17_s13  ;;  %s27_s15 = int_to_ptr.vmem [resolvable:$true] %s26_s15 }
   0x4   :  { %s599_s16 = scalar_lea.vmem %s18_s13, 896  ;;  %p604_p1 = scmp.lt.s32.totalorder %s18_s13, %s18_s13 }
   0x5   :  { %p600_p0 = scmp.ne.s32.totalorder %s18_s13, %s599_s16  ;;  %p605_p2 = scmp.lt.s32.totalorder %s599_s16, %s599_s16 }
   0x7   :  { %p606_p3 = por %p605_p2, %p604_p1 }
   0x9   :  { %p607_p4 = pnand %p606_p3, %p600_p0 }
   0xb   :  { %610 = shalt.err (!%p607_p4)
}
   0xc   :  { %20 = dma.hbm_to_vmem [thread:$0]  %s696_s0, 896, %s18_s13, [#allocation3]  }
   0xd   :  { %s619_s19 = scalar_lea.vmem %s27_s15, 12544  ;;  %p624_p6 = scmp.lt.s32.totalorder %s27_s15, %s27_s15 }
   0xe   :  { %p620_p5 = scmp.ne.s32.totalorder %s27_s15, %s619_s19  ;;  %p625_p7 = scmp.lt.s32.totalorder %s619_s19, %s619_s19 }
  0x10   :  { %p626_p8 = por %p625_p7, %p624_p6 }
  0x12   :  { %p627_p9 = pnand %p626_p8, %p620_p5 }
  0x14   :  { %630 = shalt.err (!%p627_p9)
}
  0x15   :  { %s659_s20 = smov 128   ;;  %s660_s21 = smov 8  }
  0x16   :  { %32 = dma.hbm_to_vmem [thread:$0]  %s697_s1, 12544, %s27_s15, [#allocation6], %s659_s20, %s659_s20, %s660_s21  }
  0x17   :  { %651 = dma.done.wait [#allocation3], 896  }
  0x18   :  { %652 = vsyncadd [#allocation3], 4294966400 }
  0x19   :  { %653 = dma.done.wait [#allocation6], 12544  }
  0x1a   :  { %654 = vsyncadd [#allocation6], 4294954752  ;;  %v79_v0 = vld [vmem:[#allocation5 + $0xf8] sm:$0xff]  ;;  %v78_v2 = vld [vmem:[#allocation5 + $0xf0] sm:$0xff]  ;;  %vm153_vm0 = vcmask 130048   ;;  %vm662_vm1 = vmmov 0  }
  0x1b   :  { %v63_v1 = vld [vmem:[#allocation5 + $0x78] sm:$0xff]  ;;  %465 = vmatprep.subr.mxu0 %v79_v0  ;;  %v62_v4 = vld [vmem:[#allocation5 + $0x70] sm:$0xff]  ;;  %v77_v6 = vld [vmem:[#allocation5 + $0xe8] sm:$0xff]  ;;  %s663_s24 = smov [#allocation7]  }
  0x1c   :  { %v111_v3 = vld [vmem:[#allocation5 + $0x1f8] sm:$0xff]  ;;  %466 = vmatpush3.msra.mxu0 %v63_v1  ;;  %v110_v7 = vld [vmem:[#allocation5 + $0x1f0] sm:$0xff]  ;;  %v61_v8 = vld [vmem:[#allocation5 + $0x68] sm:$0xff]  ;;  %s453_s25 = sshll.u32 %s663_s24, 4  ;;  %s454_s25 = int_to_ptr.vmem [resolvable:$true] %s453_s25 }
  0x1d   :  { %v95_v5 = vld [vmem:[#allocation5 + $0x178] sm:$0xff]  ;;  %500 = vmatprep.subr.mxu1 %v111_v3  ;;  %467 = vmatprep.subr.mxu0 %v78_v2  ;;  %v94_v9 = vld [vmem:[#allocation5 + $0x170] sm:$0xff]  ;;  %v109_v10 = vld [vmem:[#allocation5 + $0x1e8] sm:$0xff]  ;;  %p636_p11 = scmp.lt.s32.totalorder %s454_s25, %s454_s25 }
  0x1e   :  { %501 = vmatpush3.msra.mxu1 %v95_v5  ;;  %468 = vmatpush3.msra.mxu0 %v62_v4  ;;  %v76_v11 = vld [vmem:[#allocation5 + $0xe0] sm:$0xff]  ;;  %v93_v12 = vld [vmem:[#allocation5 + $0x168] sm:$0xff]  ;;  %v75_v15 = vld [vmem:[#allocation5 + $0xd8] sm:$0xff] }
  0x1f   :  { %502 = vmatprep.subr.mxu1 %v110_v7  ;;  %469 = vmatprep.subr.mxu0 %v77_v6  ;;  %v60_v13 = vld [vmem:[#allocation5 + $0x60] sm:$0xff]  ;;  %v59_v17 = vld [vmem:[#allocation5 + $0x58] sm:$0xff]  ;;  %v74_v19 = vld [vmem:[#allocation5 + $0xd0] sm:$0xff] }
  0x20   :  { %503 = vmatpush3.msra.mxu1 %v94_v9  ;;  %v108_v14 = vld [vmem:[#allocation5 + $0x1e0] sm:$0xff]  ;;  %470 = vmatpush3.msra.mxu0 %v61_v8  ;;  %v107_v18 = vld [vmem:[#allocation5 + $0x1d8] sm:$0xff]  ;;  %v58_v21 = vld [vmem:[#allocation5 + $0x50] sm:$0xff] }
  0x21   :  { %504 = vmatprep.subr.mxu1 %v109_v10  ;;  %v92_v16 = vld [vmem:[#allocation5 + $0x160] sm:$0xff]  ;;  %471 = vmatprep.subr.mxu0 %v76_v11  ;;  %v91_v20 = vld [vmem:[#allocation5 + $0x158] sm:$0xff]  ;;  %v106_v22 = vld [vmem:[#allocation5 + $0x1d0] sm:$0xff] }
  0x22   :  { %505 = vmatpush3.msra.mxu1 %v93_v12  ;;  %472 = vmatpush3.msra.mxu0 %v60_v13  ;;  %v73_v23 = vld [vmem:[#allocation5 + $0xc8] sm:$0xff]  ;;  %v90_v24 = vld [vmem:[#allocation5 + $0x150] sm:$0xff]  ;;  %v72_v27 = vld [vmem:[#allocation5 + $0xc0] sm:$0xff] }
  0x23   :  { %506 = vmatprep.subr.mxu1 %v108_v14  ;;  %473 = vmatprep.subr.mxu0 %v75_v15  ;;  %v57_v25 = vld [vmem:[#allocation5 + $0x48] sm:$0xff]  ;;  %v56_v29 = vld [vmem:[#allocation5 + $0x40] sm:$0xff]  ;;  %v71_v31 = vld [vmem:[#allocation5 + $0xb8] sm:$0xff]  ;;  %v661_v14 = vmov 0.0  }
  0x24   :  { %507 = vmatpush3.msra.mxu1 %v92_v16  ;;  %474 = vmatpush3.msra.mxu0 %v59_v17  ;;  %v105_v26 = vld [vmem:[#allocation5 + $0x1c8] sm:$0xff]  ;;  %v104_v30 = vld [vmem:[#allocation5 + $0x1c0] sm:$0xff]  ;;  %v55_v33 = vld [vmem:[#allocation5 + $0x38] sm:$0xff] }
  0x25   :  { %508 = vmatprep.subr.mxu1 %v107_v18  ;;  %475 = vmatprep.subr.mxu0 %v74_v19  ;;  %v89_v28 = vld [vmem:[#allocation5 + $0x148] sm:$0xff]  ;;  %v88_v32 = vld [vmem:[#allocation5 + $0x140] sm:$0xff]  ;;  %v103_v34 = vld [vmem:[#allocation5 + $0x1b8] sm:$0xff] }
  0x26   :  { %509 = vmatpush3.msra.mxu1 %v91_v20  ;;  %476 = vmatpush3.msra.mxu0 %v58_v21  ;;  %v70_v35 = vld [vmem:[#allocation5 + $0xb0] sm:$0xff]  ;;  %v87_v36 = vld [vmem:[#allocation5 + $0x138] sm:$0xff]  ;;  %v69_v39 = vld [vmem:[#allocation5 + $0xa8] sm:$0xff] }
  0x27   :  { %510 = vmatprep.subr.mxu1 %v106_v22  ;;  %477 = vmatprep.subr.mxu0 %v73_v23  ;;  %v54_v37 = vld [vmem:[#allocation5 + $0x30] sm:$0xff]  ;;  %v53_v41 = vld [vmem:[#allocation5 + $0x28] sm:$0xff]  ;;  %v68_v43 = vld [vmem:[#allocation5 + $0xa0] sm:$0xff] }
  0x28   :  { %511 = vmatpush3.msra.mxu1 %v90_v24  ;;  %478 = vmatpush3.msra.mxu0 %v57_v25  ;;  %v102_v38 = vld [vmem:[#allocation5 + $0x1b0] sm:$0xff]  ;;  %v101_v42 = vld [vmem:[#allocation5 + $0x1a8] sm:$0xff]  ;;  %v52_v45 = vld [vmem:[#allocation5 + $0x20] sm:$0xff] }
  0x29   :  { %512 = vmatprep.subr.mxu1 %v105_v26  ;;  %479 = vmatprep.subr.mxu0 %v72_v27  ;;  %v86_v40 = vld [vmem:[#allocation5 + $0x130] sm:$0xff]  ;;  %v85_v44 = vld [vmem:[#allocation5 + $0x128] sm:$0xff]  ;;  %v100_v46 = vld [vmem:[#allocation5 + $0x1a0] sm:$0xff] }
  0x2a   :  { %513 = vmatpush3.msra.mxu1 %v89_v28  ;;  %480 = vmatpush3.msra.mxu0 %v56_v29  ;;  %v67_v47 = vld [vmem:[#allocation5 + $0x98] sm:$0xff]  ;;  %v84_v48 = vld [vmem:[#allocation5 + $0x120] sm:$0xff]  ;;  %v66_v51 = vld [vmem:[#allocation5 + $0x90] sm:$0xff] }
  0x2b   :  { %514 = vmatprep.subr.mxu1 %v104_v30  ;;  %481 = vmatprep.subr.mxu0 %v71_v31  ;;  %v51_v49 = vld [vmem:[#allocation5 + $0x18] sm:$0xff]  ;;  %v50_v53 = vld [vmem:[#allocation5 + $0x10] sm:$0xff]  ;;  %v65_v55 = vld [vmem:[#allocation5 + $0x88] sm:$0xff] }
  0x2c   :  { %515 = vmatpush3.msra.mxu1 %v88_v32  ;;  %482 = vmatpush3.msra.mxu0 %v55_v33  ;;  %v99_v50 = vld [vmem:[#allocation5 + $0x198] sm:$0xff]  ;;  %v98_v54 = vld [vmem:[#allocation5 + $0x190] sm:$0xff]  ;;  %v49_v57 = vld [vmem:[#allocation5 + $0x8] sm:$0xff] }
  0x2d   :  { %516 = vmatprep.subr.mxu1 %v103_v34  ;;  %483 = vmatprep.subr.mxu0 %v70_v35  ;;  %v83_v52 = vld [vmem:[#allocation5 + $0x118] sm:$0xff]  ;;  %v82_v56 = vld [vmem:[#allocation5 + $0x110] sm:$0xff]  ;;  %v97_v58 = vld [vmem:[#allocation5 + $0x188] sm:$0xff] }
  0x2e   :  { %517 = vmatpush3.msra.mxu1 %v87_v36  ;;  %484 = vmatpush3.msra.mxu0 %v54_v37  ;;  %v64_v59 = vld [vmem:[#allocation5 + $0x80] sm:$0xff]  ;;  %v42_v60 = vld [vmem:[#allocation2 + $0x8] sm:$0xff]  ;;  %v81_v62 = vld [vmem:[#allocation5 + $0x108] sm:$0xff] }
  0x2f   :  { %518 = vmatprep.subr.mxu1 %v102_v38  ;;  %485 = vmatprep.subr.mxu0 %v69_v39  ;;  %v48_v61 = vld [vmem:[#allocation5] sm:$0xff]  ;;  %v41_v63 = vld [vmem:[#allocation2] sm:$0xff]  ;;  %v143_v1 = vld [vmem:[#allocation5 + $0x2f8] sm:$0xff] }
  0x30   :  { %519 = vmatpush3.msra.mxu1 %v86_v40  ;;  %486 = vmatpush3.msra.mxu0 %v53_v41  ;;  %v96_v0 = vld [vmem:[#allocation5 + $0x180] sm:$0xff]  ;;  %v127_v4 = vld [vmem:[#allocation5 + $0x278] sm:$0xff]  ;;  %v142_v6 = vld [vmem:[#allocation5 + $0x2f0] sm:$0xff] }
  0x31   :  { %520 = vmatprep.subr.mxu1 %v101_v42  ;;  %487 = vmatprep.subr.mxu0 %v68_v43  ;;  %v80_v2 = vld [vmem:[#allocation5 + $0x100] sm:$0xff]  ;;  %v43_v5 = vld [vmem:[#allocation2 + $0x10] sm:$0xff]  ;;  %v126_v7 = vld [vmem:[#allocation5 + $0x270] sm:$0xff] }
  0x32   :  { %521 = vmatpush3.msra.mxu1 %v85_v44  ;;  %488 = vmatpush3.msra.mxu0 %v52_v45  ;;  %v44_v3 = vld [vmem:[#allocation2 + $0x18] sm:$0xff]  ;;  %v46_v8 = vld [vmem:[#allocation2 + $0x28] sm:$0xff]  ;;  %v141_v9 = vld [vmem:[#allocation5 + $0x2e8] sm:$0xff] }
  0x33   :  { %522 = vmatprep.subr.mxu1 %v100_v46  ;;  %489 = vmatprep.subr.mxu0 %v67_v47  ;;  %v125_v10 = vld [vmem:[#allocation5 + $0x268] sm:$0xff]  ;;  %v140_v12 = vld [vmem:[#allocation5 + $0x2e0] sm:$0xff]  ;;  %v139_v16 = vld [vmem:[#allocation5 + $0x2d8] sm:$0xff] }
  0x34   :  { %523 = vmatpush3.msra.mxu1 %v84_v48  ;;  %490 = vmatpush3.msra.mxu0 %v51_v49  ;;  %v145_v11 = vld [vmem:[#allocation5 + $0x308] sm:$0xff]  ;;  %v124_v13 = vld [vmem:[#allocation5 + $0x260] sm:$0xff]  ;;  %v123_v17 = vld [vmem:[#allocation5 + $0x258] sm:$0xff] }
  0x35   :  { %524 = vmatprep.subr.mxu1 %v99_v50  ;;  %491 = vmatprep.subr.mxu0 %v66_v51  ;;  %v144_v15 = vld [vmem:[#allocation5 + $0x300] sm:$0xff]  ;;  %v47_v18 = vld [vmem:[#allocation2 + $0x30] sm:$0xff]  ;;  %v138_v19 = vld [vmem:[#allocation5 + $0x2d0] sm:$0xff] }
  0x36   :  { %525 = vmatpush3.msra.mxu1 %v83_v52  ;;  %492 = vmatpush3.msra.mxu0 %v50_v53  ;;  %v122_v20 = vld [vmem:[#allocation5 + $0x250] sm:$0xff]  ;;  %v137_v21 = vld [vmem:[#allocation5 + $0x2c8] sm:$0xff]  ;;  %v136_v23 = vld [vmem:[#allocation5 + $0x2c0] sm:$0xff] }
  0x37   :  { %526 = vmatprep.subr.mxu1 %v98_v54  ;;  %493 = vmatprep.subr.mxu0 %v65_v55  ;;  %v121_v22 = vld [vmem:[#allocation5 + $0x248] sm:$0xff]  ;;  %v120_v24 = vld [vmem:[#allocation5 + $0x240] sm:$0xff]  ;;  %v135_v25 = vld [vmem:[#allocation5 + $0x2b8] sm:$0xff] }
  0x38   :  { %527 = vmatpush3.msra.mxu1 %v82_v56  ;;  %494 = vmatpush3.msra.mxu0 %v49_v57  ;;  %v119_v26 = vld [vmem:[#allocation5 + $0x238] sm:$0xff]  ;;  %v134_v27 = vld [vmem:[#allocation5 + $0x2b0] sm:$0xff]  ;;  %v133_v29 = vld [vmem:[#allocation5 + $0x2a8] sm:$0xff] }
  0x39   :  { %528 = vmatprep.subr.mxu1 %v97_v58  ;;  %495 = vmatprep.subr.mxu0 %v64_v59  ;;  %v118_v28 = vld [vmem:[#allocation5 + $0x230] sm:$0xff]  ;;  %v117_v30 = vld [vmem:[#allocation5 + $0x228] sm:$0xff]  ;;  %v132_v31 = vld [vmem:[#allocation5 + $0x2a0] sm:$0xff] }
  0x3a   :  { %221 = vmatprep.mubr.f32.mxu0 %v42_v60  ;;  %496 = vmatpush3.msra.mxu0 %v48_v61  ;;  %v116_v32 = vld [vmem:[#allocation5 + $0x220] sm:$0xff]  ;;  %v131_v33 = vld [vmem:[#allocation5 + $0x298] sm:$0xff]  ;;  %v130_v35 = vld [vmem:[#allocation5 + $0x290] sm:$0xff] }
  0x3b   :  { %529 = vmatpush3.msra.mxu1 %v81_v62  ;;  %222 = vmatmul.mubr.f32.vlgmr.msra.gmra.mxu0 %v41_v63  ;;  %v115_v34 = vld [vmem:[#allocation5 + $0x218] sm:$0xff]  ;;  %v114_v36 = vld [vmem:[#allocation5 + $0x210] sm:$0xff]  ;;  %v129_v37 = vld [vmem:[#allocation5 + $0x288] sm:$0xff] }
  0x3c   :  { %530 = vmatprep.subr.mxu1 %v96_v0  ;;  %535 = vmatprep.subr.mxu0 %v143_v1  ;;  %v113_v38 = vld [vmem:[#allocation5 + $0x208] sm:$0xff]  ;;  %v128_v39 = vld [vmem:[#allocation5 + $0x280] sm:$0xff] }
  0x3d   :  { %531 = vmatpush3.msra.mxu1 %v80_v2  ;;  %291 = vmatprep.mubr.f32.mxu1 %v44_v3  ;;  %v112_v40 = vld [vmem:[#allocation5 + $0x200] sm:$0xff]  ;;  %v45_v41 = vld [vmem:[#allocation2 + $0x20] sm:$0xff] }
  0x3e   :  { %536 = vmatpush3.msra.mxu0 %v127_v4  ;;  %292 = vmatmul.mubr.f32.vlgmr.msra.gmra.mxu1 %v43_v5  ;;  %v463_v49 = vld [vmem:[%s698_s2] ss:$0 sm:$0xff]  ;;  %s631_s2 = scalar_lea.vmem %s454_s25, 128 }
  0x3f   :  { %537 = vmatprep.subr.mxu0 %v142_v6  ;;  %361 = vmatprep.mubr.f32.mxu0 %v46_v8  ;;  %p632_p10 = scmp.ne.s32.totalorder %s454_s25, %s631_s2  ;;  %p637_p12 = scmp.lt.s32.totalorder %s631_s2, %s631_s2 }
  0x40   :  { %538 = vmatpush3.msra.mxu0 %v126_v7  ;;  %573 = vmatprep.subr.mxu1 %v661_v14 }
  0x41   :  { %539 = vmatprep.subr.mxu0 %v141_v9  ;;  %574 = vmatpush3.msra.mxu1 %v145_v11  ;;  %p638_p13 = por %p637_p12, %p636_p11 }
  0x42   :  { %540 = vmatpush3.msra.mxu0 %v125_v10  ;;  %575 = vmatprep.subr.mxu1 %v661_v14 }
  0x43   :  { %541 = vmatprep.subr.mxu0 %v140_v12  ;;  %576 = vmatpush3.msra.mxu1 %v144_v15  ;;  %p639_p0 = pnand %p638_p13, %p632_p10 }
  0x44   :  { %542 = vmatpush3.msra.mxu0 %v124_v13  ;;  %577 = vmatprep.mubr.msk.f32.mxu1 %vm662_vm1, %v661_v14 }
  0x45   :  { %543 = vmatprep.subr.mxu0 %v139_v16  ;;  %578 = vmatmul.mubr.msk.f32.vlgmr.msra.gmra.mxu1 %vm153_vm0, %v47_v18 }
  0x46   :  { %544 = vmatpush3.msra.mxu0 %v123_v17 }
  0x47   :  { %545 = vmatprep.subr.mxu0 %v138_v19 }
  0x48   :  { %546 = vmatpush3.msra.mxu0 %v122_v20 }
  0x49   :  { %547 = vmatprep.subr.mxu0 %v137_v21 }
  0x4a   :  { %548 = vmatpush3.msra.mxu0 %v121_v22 }
  0x4b   :  { %549 = vmatprep.subr.mxu0 %v136_v23 }
  0x4c   :  { %550 = vmatpush3.msra.mxu0 %v120_v24 }
  0x4d   :  { %551 = vmatprep.subr.mxu0 %v135_v25 }
  0x4e   :  { %552 = vmatpush3.msra.mxu0 %v119_v26 }
  0x4f   :  { %553 = vmatprep.subr.mxu0 %v134_v27 }
  0x50   :  { %554 = vmatpush3.msra.mxu0 %v118_v28 }
  0x51   :  { %555 = vmatprep.subr.mxu0 %v133_v29 }
  0x52   :  { %556 = vmatpush3.msra.mxu0 %v117_v30 }
  0x53   :  { %557 = vmatprep.subr.mxu0 %v132_v31 }
  0x54   :  { %558 = vmatpush3.msra.mxu0 %v116_v32 }
  0x55   :  { %559 = vmatprep.subr.mxu0 %v131_v33 }
  0x56   :  { %560 = vmatpush3.msra.mxu0 %v115_v34 }
  0x57   :  { %561 = vmatprep.subr.mxu0 %v130_v35 }
  0x58   :  { %562 = vmatpush3.msra.mxu0 %v114_v36 }
  0x59   :  { %563 = vmatprep.subr.mxu0 %v129_v37 }
  0x5a   :  { %564 = vmatpush3.msra.mxu0 %v113_v38 }
  0x5b   :  { %565 = vmatprep.subr.mxu0 %v128_v39 }
  0x5c   :  { %566 = vmatpush3.msra.mxu0 %v112_v40 }
  0x5d   :  { %362 = vmatmul.mubr.f32.vlgmr.msra.gmra.mxu0 %v45_v41 }
  0xfb   :  { %v497_v46 = vpop.f32.mrf.mxu0 }
  0xfd   :  { %v498_v47 = vpop.f32.mrf.mxu0 }
  0xfe   :  { %v532_v42 = vpop.f32.mrf.mxu1  ;;  %v499_v48 = vadd.f32 %v498_v47, %v497_v46 }
 0x100   :  { %v533_v43 = vpop.f32.mrf.mxu1  ;;  %v224_v50 = vadd.f32 %v499_v48, %v463_v49 }
 0x101   :  { %v534_v51 = vadd.f32 %v533_v43, %v532_v42 }
 0x103   :  { %v294_v54 = vadd.f32 %v534_v51, %v224_v50 }
 0x105   :  { %v433_v44 = vpop.f32.mrf.mxu1 }
 0x107   :  { %v579_v45 = vpop.f32.mrf.mxu1 }
 0x11d   :  { %v567_v52 = vpop.f32.mrf.mxu0 }
 0x11f   :  { %v568_v53 = vpop.f32.mrf.mxu0 }
 0x120   :  { %v569_v55 = vadd.f32 %v568_v53, %v567_v52 }
 0x122   :  { %v364_v56 = vadd.f32 %v569_v55, %v294_v54 }
 0x124   :  { %v434_v57 = vadd.f32 %v433_v44, %v364_v56 }
 0x126   :  { %437 = vmax.xlane.f32.xlu0 %v434_v57 }
 0x1af   :  { %v438_v58 = vpop.xlane.xlu0 %437 }
 0x1b0   :  { %v439_v59 = vsub.f32 %v434_v57, %v438_v58 }
 0x1b2   :  { %v440_v60 = vmul.f32 1.442695, %v439_v59 }
 0x1b4   :  { %587 = vpow2.f32 %v440_v60 }
 0x1c1   :  { %v588_v61 = vpop.eup %587 }
 0x1c2   :  { %442 = vadd.xlane.f32.xlu0 %v588_v61 }
 0x24b   :  { %v443_v62 = vpop.xlane.xlu0 %442 }
 0x24c   :  { %589 = vrcp.f32 %v443_v62 }
 0x259   :  { %v590_v63 = vpop.eup %589 }
 0x25a   :  { %v445_v0 = vmul.f32 %v590_v63, %v588_v61 }
 0x25c   :  { %446 = vst [vmem:[#allocation7] sm:$0xff] %v445_v0 }
 0x25d   :  { %642 = shalt.err (!%p639_p0)
}
 0x25e   :  { %456 = dma.vmem_to_hbm [thread:$0]  %s454_s25, 128, %s699_s3, [#allocation4]  }
 0x25f   :  { %655 = dma.done.wait [#allocation4], 128  }
 0x260   :  { %656 = vsyncadd [#allocation4], 4294967168 }
 0x261   :  { %460 = vsyncpa [#allocation3], 1 }
 0x262   :  { %461 = vsyncpa [#allocation6], 1 }
 0x263   :  { %462 = vsyncpa [#allocation4], 1 }

</bundles_post_ra>
